<compile_context>
chip_gen: v5e
topology: v5e:2x2
jax: 0.10.0
libtpu: 0.0.40
codegen_flags: <defaults>
</compile_context>

<pallas_src>
import functools

import jax
import jax.numpy as jnp
from jax.experimental import pallas as pl
from jax.experimental.pallas import tpu as pltpu


# ----------------------------------------------------------------------------- kernel
def _icnn_kernel(x_ref, wskip_ref, bskip_ref, explw_ref, out_ref, *,
                 PH, num_internal):
    """One batch tile of the whole ICNN forward.

    Shapes (PH = pack*H lanes, TB = packed batch rows per tile):
      x_ref     : (TB, PH)              input rows, `pack` logical rows per packed row
      wskip_ref : (PH, (L+2)*PH)        fused, block-diagonal skip weights (compute dtype)
      bskip_ref : (1,  (L+2)*PH)        fused skip biases (f32)
      explw_ref : (L+1, PH, PH)         block-diagonal exp(log_W) (compute dtype)
      out_ref   : (TB, PH)
    """
    f32 = jnp.float32
    mm_dtype = wskip_ref.dtype
    # Cast the input tile in-kernel (avoids a separate wrapper-side HBM pass).
    x = x_ref[...].astype(mm_dtype)                               # (TB, PH)

    # One fused, lane-dense skip matmul.  Column block l (width PH, 128/256-aligned)
    # is skip layer l; order: [input_layer | internal_0..internal_{L-1} | output_skip].
    S = jnp.dot(x, wskip_ref[...], preferred_element_type=f32)    # (TB, (L+2)*PH) f32
    S = S + bskip_ref[...]                                        # f32 bias broadcast

    # input_layer output
    z = S[:, 0:PH]

    # internal InputConvexLayers (static unrolled; elementwise math stays f32)
    for l in range(num_internal):
        skip = S[:, (l + 1) * PH:(l + 2) * PH]
        pos = jnp.dot(z.astype(mm_dtype), explw_ref[l],
                      preferred_element_type=f32)
        z = jnp.maximum(skip + pos, 0.0)                          # activation = ReLU

    # output InputConvexLayer (activate_last = False)
    skip_o = S[:, (num_internal + 1) * PH:(num_internal + 2) * PH]
    pos_o = jnp.dot(z.astype(mm_dtype), explw_ref[num_internal],
                    preferred_element_type=f32)
    # PH is a multiple of 128 -> full-lane, unmasked stores.
    out_ref[...] = (skip_o + pos_o).astype(out_ref.dtype)


# ----------------------------------------------------------------------------- wrapper helpers
def _default_pack():
    """Rows packed per 32-bit lane row.  4 -> 128 lanes (works everywhere);
    8 -> K=256, consumed in one pass on v6e/v7x's 256x256 MXU."""
    try:
        kind = jax.devices()[0].device_kind.lower()
        if ("v6" in kind) or ("v7" in kind) or ("7x" in kind):
            return 8
    except Exception:
        pass
    return 4


def _prepare_weights(params, pack, compute_dtype):
    """Wrapper-side weight prep: pre-exp, pre-transpose, block-diagonalize for the
    lane-packed layout, and fuse all skip projections into one matrix."""
    L = params["ws"].shape[0]
    eye_p = jnp.eye(pack, dtype=jnp.float32)
    bd = lambda w: jnp.kron(eye_p, w)                      # (pack*H, pack*H) block-diag

    # Skip weights: PyTorch (out, in) -> (in, out), block-diag, concat along out dim.
    skip_ws = [params["w_in"].T] + [params["ws"][l].T for l in range(L)] + [params["w_so"].T]
    w_skip = jnp.concatenate([bd(w) for w in skip_ws], axis=1)          # (PH, (L+2)*PH)
    skip_bs = [params["b_in"]] + [params["bs"][l] for l in range(L)] + [params["b_so"]]
    b_skip = jnp.concatenate([jnp.tile(b, (1, pack)) for b in skip_bs], axis=1)  # (1,(L+2)*PH)

    # Positive-linear weights: exp in f32, transpose, block-diag, then cast.
    explw = jnp.stack([bd(jnp.exp(params["lw"][l]).T) for l in range(L)]
                      + [bd(jnp.exp(params["lw_o"]).T)], axis=0)        # (L+1, PH, PH)

    return (w_skip.astype(compute_dtype),
            b_skip.astype(jnp.float32),
            explw.astype(compute_dtype))


def _pick_block_rows(bp_rows, pack):
    """Batch tile size in *packed* rows.

    Per-grid-step overhead is ~0.35us and the weights are grid-invariant, so big
    tiles win: cap at 8192 logical rows (= 8192/pack packed rows), i.e. ~1 MiB per
    f32 x/out tile at H=32 — comfortably inside the 32 MiB scoped-VMEM default on
    every generation (v5e/v6e/v7x).  Small batches get a single grid step; large
    batches are split into an even number of tiles so v7x's two TensorCores share
    the "parallel" axis evenly (no effect on single-TC v5e/v6e)."""
    cap = max(8192 // pack, 64)
    if bp_rows <= cap:
        return bp_rows                         # single step; don't shrink just to get grid>=2
    n = pl.cdiv(bp_rows, cap)
    if n % 2:
        n += 1                                 # even tile count for v7x's 2 TCs
    bb = pl.cdiv(bp_rows, n)
    return max(16 * pl.cdiv(bb, 16), 16)       # 16-aligned (bf16-safe sublane tiling)


# ----------------------------------------------------------------------------- public entry
def icnn_forward(x, params, *, block_rows=None, pack=None,
                 compute_dtype=jnp.bfloat16):
    """Fused ICNN forward.

    compute_dtype is the MXU operand dtype (default bf16: ~2-3x matmul throughput
    and half the weight/input DMA bytes on every generation; accumulation, bias,
    ReLU and the skip+pos sums stay in f32).  Expected precision of the bf16 fast
    path: intermediate z is truncated to bf16 between layers, so outputs match the
    exact f32 math to roughly bf16 relative accuracy (~1e-2 after 3 layers); pass
    compute_dtype=jnp.float32 for validation-grade numerics.
    """
    B, H = x.shape
    L = params["ws"].shape[0]                                    # number of internal layers
    if pack is None:
        pack = _default_pack()
    PH = pack * H
    n_skip = (L + 2) * PH

    w_skip, b_skip, explw = _prepare_weights(params, pack, compute_dtype)

    # Lane-pack `pack` logical rows per packed row.  The reshape is contiguous
    # (free); padding only happens when B % pack != 0 and is sliced off at the end.
    bp_rows = pl.cdiv(B, pack)
    b_pad = bp_rows * pack
    xp = x if b_pad == B else jnp.pad(x, ((0, b_pad - B), (0, 0)))
    xp = xp.reshape(bp_rows, PH)

    if block_rows is None:
        block_rows = _pick_block_rows(bp_rows, pack)
    grid = (pl.cdiv(bp_rows, block_rows),)

    # Advisory cost hint for XLA scheduling (actual MXU work, incl. block-diag zeros).
    flops = 2 * bp_rows * PH * (n_skip + (L + 1) * PH)
    bytes_accessed = (xp.size * xp.dtype.itemsize
                      + bp_rows * PH * 4                          # f32 output
                      + w_skip.size * w_skip.dtype.itemsize
                      + b_skip.size * 4
                      + explw.size * explw.dtype.itemsize)

    kernel = functools.partial(_icnn_kernel, PH=PH, num_internal=L)
    out_packed = pl.pallas_call(
        kernel,
        out_shape=jax.ShapeDtypeStruct((bp_rows, PH), x.dtype),
        grid=grid,
        in_specs=[
            pl.BlockSpec((block_rows, PH), lambda i: (i, 0)),     # x, batch-tiled
            pl.BlockSpec((PH, n_skip), lambda i: (0, 0)),         # fused skip weights (resident)
            pl.BlockSpec((1, n_skip), lambda i: (0, 0)),          # fused skip biases (f32)
            pl.BlockSpec((L + 1, PH, PH), lambda i: (0, 0, 0)),   # pre-exp'd positive weights
        ],
        out_specs=pl.BlockSpec((block_rows, PH), lambda i: (i, 0)),
        compiler_params=pltpu.CompilerParams(
            dimension_semantics=("parallel",)),
        cost_estimate=pl.CostEstimate(flops=int(flops), transcendentals=0,
                                      bytes_accessed=int(bytes_accessed)),
    )(xp, w_skip, b_skip, explw)
    # NOTE: grid-invariant operands are not re-DMA'd between steps (constant
    # index_map), so they are effectively resident across the whole grid.

    out = out_packed.reshape(b_pad, H)
    return out if b_pad == B else out[:B]


# ----------------------------------------------------------------------------- reference
def icnn_reference(x, params, compute_dtype=jnp.float32):
    """Pure-JAX reference mirroring the kernel's cast sequence exactly:
    MXU operands in `compute_dtype`, f32 accumulation, f32 bias/ReLU/skip+pos math.
    With compute_dtype=f32 this is the exact original forward pass."""
    cd = compute_dtype
    f32 = jnp.float32
    hi = jax.lax.Precision.HIGHEST
    L = params["ws"].shape[0]
    xc = x.astype(cd)

    def lin(a, w):            # torch-layout weight (out, in)
        return jnp.dot(a, w.T.astype(cd), preferred_element_type=f32, precision=hi)

    def plin(a, lw):          # PositiveLinear
        return jnp.dot(a.astype(cd), jnp.exp(lw).T.astype(cd),
                       preferred_element_type=f32, precision=hi)

    z = lin(xc, params["w_in"]) + params["b_in"][0]
    for l in range(L):
        z = jnp.maximum(lin(xc, params["ws"][l]) + params["bs"][l, 0]
                        + plin(z, params["lw"][l]), 0.0)
    out = lin(xc, params["w_so"]) + params["b_so"][0] + plin(z, params["lw_o"])
    return out.astype(x.dtype)


def init_params(key, H, num_internal, dtype=jnp.float32):
    """Deterministic synthetic init (xavier-uniform-like)."""
    bound = (6.0 / (H + H)) ** 0.5
    keys = jax.random.split(key, 9)
    u = lambda k, shape: jax.random.uniform(k, shape, dtype, -bound, bound)
    return {
        "w_in": u(keys[0], (H, H)),
        "b_in": u(keys[1], (1, H)),
        "ws":   u(keys[2], (num_internal, H, H)),
        "bs":   u(keys[3], (num_internal, 1, H)),
        "lw":   u(keys[4], (num_internal, H, H)),
        "w_so": u(keys[5], (H, H)),
        "b_so": u(keys[6], (1, H)),
        "lw_o": u(keys[7], (H, H)),
    }


if __name__ == "__main__":
    # layer_sizes = [32, 32, 32, 32, 32] -> 2 internal layers, hidden = 32
    H = 32
    NUM_INTERNAL = 2

    key = jax.random.PRNGKey(0)
    kx, kp = jax.random.split(key)
    params = init_params(kp, H, NUM_INTERNAL)

    for B in (256, 50):   # 50 exercises the pad-to-pack / partial-tile path
        x = jax.random.normal(jax.random.fold_in(kx, B), (B, H), jnp.float32)

        # f32 MXU operands: check against the exact reference.
        out_f32 = jax.block_until_ready(
            icnn_forward(x, params, compute_dtype=jnp.float32))
        ref_f32 = icnn_reference(x, params, compute_dtype=jnp.float32)
        assert out_f32.shape == (B, H)
        assert jnp.allclose(out_f32, ref_f32, rtol=5e-3, atol=5e-2), \
            "f32 kernel mismatch vs reference"

        # Default bf16 fast path: check against a reference using the SAME cast
        # sequence (bf16 MXU operands, f32 accumulation) — apples to apples.
        out_bf16 = jax.block_until_ready(icnn_forward(x, params))
        ref_bf16 = icnn_reference(x, params, compute_dtype=jnp.bfloat16)
        assert out_bf16.shape == (B, H)
        assert bool(jnp.all(jnp.isfinite(out_bf16)))
        assert jnp.allclose(out_bf16, ref_bf16, rtol=2e-2, atol=1.0), \
            "bf16 kernel mismatch vs bf16-matched reference"

    print("KERNEL_OK")
</pallas_src>

<mosaic_0001>
module attributes {stable_mosaic.version = 11 : i64} {
  func.func @_icnn_kernel(%arg0: i32, %arg1: memref<64x128xf32, #tpu.memory_space<vmem>>, %arg2: memref<128x512xf32, #tpu.memory_space<vmem>>, %arg3: memref<1x512xf32, #tpu.memory_space<vmem>>, %arg4: memref<3x128x128xf32, #tpu.memory_space<vmem>>, %arg5: memref<64x128xf32, #tpu.memory_space<vmem>>) attributes {dimension_semantics = [#tpu.dimension_semantics<parallel>], iteration_bounds = array<i64: 1>, scalar_prefetch = 0 : i64, scratch_operands = 0 : i64, tpu.core_type = #tpu.core_type<tc>, window_params = [{transform_indices = @transform_0, window_bounds = array<i64: 64, 128>}, {pipeline_mode = #tpu.pipeline_mode<synchronous>, transform_indices = @transform_1, window_bounds = array<i64: 128, 512>}, {pipeline_mode = #tpu.pipeline_mode<synchronous>, transform_indices = @transform_2, window_bounds = array<i64: 1, 512>}, {pipeline_mode = #tpu.pipeline_mode<synchronous>, transform_indices = @transform_3, window_bounds = array<i64: 3, 128, 128>}, {transform_indices = @transform_4, window_bounds = array<i64: 64, 128>}]} {
    %c0 = arith.constant 0 : index
    %c0_0 = arith.constant 0 : index
    %0 = vector.load %arg1[%c0, %c0_0] : memref<64x128xf32, #tpu.memory_space<vmem>>, vector<64x128xf32>
    %c0_1 = arith.constant 0 : index
    %c0_2 = arith.constant 0 : index
    %1 = vector.load %arg2[%c0_1, %c0_2] : memref<128x512xf32, #tpu.memory_space<vmem>>, vector<128x512xf32>
    %cst = arith.constant dense<0.000000e+00> : vector<64x512xf32>
    %2 = tpu.matmul %0, %1, %cst {dimension_numbers = #tpu.dot_dimension_numbers<[1], [0], [0], [1], [0, 0, 1, 1], [], []>} : vector<64x128xf32>, vector<128x512xf32>, vector<64x512xf32> -> vector<64x512xf32>
    %c0_3 = arith.constant 0 : index
    %c0_4 = arith.constant 0 : index
    %3 = vector.load %arg3[%c0_3, %c0_4] : memref<1x512xf32, #tpu.memory_space<vmem>>, vector<1x512xf32>
    %4 = vector.broadcast %3 : vector<1x512xf32> to vector<64x512xf32>
    %5 = arith.addf %2, %4 : vector<64x512xf32>
    %6 = vector.extract_strided_slice %5 {offsets = [0, 0], sizes = [64, 128], strides = [1, 1]} : vector<64x512xf32> to vector<64x128xf32>
    %7 = vector.extract_strided_slice %5 {offsets = [0, 128], sizes = [64, 128], strides = [1, 1]} : vector<64x512xf32> to vector<64x128xf32>
    %c0_5 = arith.constant 0 : index
    %c0_6 = arith.constant 0 : index
    %c0_7 = arith.constant 0 : index
    %8 = vector.load %arg4[%c0_5, %c0_6, %c0_7] : memref<3x128x128xf32, #tpu.memory_space<vmem>>, vector<1x128x128xf32>
    %9 = vector.shape_cast %8 : vector<1x128x128xf32> to vector<128x128xf32>
    %cst_8 = arith.constant dense<0.000000e+00> : vector<64x128xf32>
    %10 = tpu.matmul %6, %9, %cst_8 {dimension_numbers = #tpu.dot_dimension_numbers<[1], [0], [0], [1], [0, 0, 1, 1], [], []>} : vector<64x128xf32>, vector<128x128xf32>, vector<64x128xf32> -> vector<64x128xf32>
    %11 = arith.addf %7, %10 : vector<64x128xf32>
    %cst_9 = arith.constant 0.000000e+00 : f32
    %12 = vector.broadcast %cst_9 : f32 to vector<64x128xf32>
    %13 = arith.maximumf %11, %12 : vector<64x128xf32>
    %14 = vector.extract_strided_slice %5 {offsets = [0, 256], sizes = [64, 128], strides = [1, 1]} : vector<64x512xf32> to vector<64x128xf32>
    %c1 = arith.constant 1 : index
    %c0_10 = arith.constant 0 : index
    %c0_11 = arith.constant 0 : index
    %15 = vector.load %arg4[%c1, %c0_10, %c0_11] : memref<3x128x128xf32, #tpu.memory_space<vmem>>, vector<1x128x128xf32>
    %16 = vector.shape_cast %15 : vector<1x128x128xf32> to vector<128x128xf32>
    %cst_12 = arith.constant dense<0.000000e+00> : vector<64x128xf32>
    %17 = tpu.matmul %13, %16, %cst_12 {dimension_numbers = #tpu.dot_dimension_numbers<[1], [0], [0], [1], [0, 0, 1, 1], [], []>} : vector<64x128xf32>, vector<128x128xf32>, vector<64x128xf32> -> vector<64x128xf32>
    %18 = arith.addf %14, %17 : vector<64x128xf32>
    %cst_13 = arith.constant 0.000000e+00 : f32
    %19 = vector.broadcast %cst_13 : f32 to vector<64x128xf32>
    %20 = arith.maximumf %18, %19 : vector<64x128xf32>
    %21 = vector.extract_strided_slice %5 {offsets = [0, 384], sizes = [64, 128], strides = [1, 1]} : vector<64x512xf32> to vector<64x128xf32>
    %c2 = arith.constant 2 : index
    %c0_14 = arith.constant 0 : index
    %c0_15 = arith.constant 0 : index
    %22 = vector.load %arg4[%c2, %c0_14, %c0_15] : memref<3x128x128xf32, #tpu.memory_space<vmem>>, vector<1x128x128xf32>
    %23 = vector.shape_cast %22 : vector<1x128x128xf32> to vector<128x128xf32>
    %cst_16 = arith.constant dense<0.000000e+00> : vector<64x128xf32>
    %24 = tpu.matmul %20, %23, %cst_16 {dimension_numbers = #tpu.dot_dimension_numbers<[1], [0], [0], [1], [0, 0, 1, 1], [], []>} : vector<64x128xf32>, vector<128x128xf32>, vector<64x128xf32> -> vector<64x128xf32>
    %25 = arith.addf %21, %24 : vector<64x128xf32>
    %c0_17 = arith.constant 0 : index
    %c0_18 = arith.constant 0 : index
    %26 = vector.load %arg5[%c0_17, %c0_18] : memref<64x128xf32, #tpu.memory_space<vmem>>, vector<64x128xf32>
    tpu.vector_store %arg5[%c0_17, %c0_18], %25 {strides = array<i32>} : memref<64x128xf32, #tpu.memory_space<vmem>>, vector<64x128xf32>,
    return
  }
  func.func @transform_0(%arg0: i32) -> (i32, i32) {
    %c0_i32 = arith.constant 0 : i32
    %c0_i32_0 = arith.constant 0 : i32
    return %arg0, %c0_i32 : i32, i32
  }
  func.func @transform_1(%arg0: i32) -> (i32, i32) {
    %c0_i32 = arith.constant 0 : i32
    %c0_i32_0 = arith.constant 0 : i32
    %c0_i32_1 = arith.constant 0 : i32
    return %c0_i32, %c0_i32_0 : i32, i32
  }
  func.func @transform_2(%arg0: i32) -> (i32, i32) {
    %c0_i32 = arith.constant 0 : i32
    %c0_i32_0 = arith.constant 0 : i32
    %c0_i32_1 = arith.constant 0 : i32
    return %c0_i32, %c0_i32_0 : i32, i32
  }
  func.func @transform_3(%arg0: i32) -> (i32, i32, i32) {
    %c0_i32 = arith.constant 0 : i32
    %c0_i32_0 = arith.constant 0 : i32
    %c0_i32_1 = arith.constant 0 : i32
    %c0_i32_2 = arith.constant 0 : i32
    return %c0_i32, %c0_i32_0, %c0_i32_1 : i32, i32, i32
  }
  func.func @transform_4(%arg0: i32) -> (i32, i32) {
    %c0_i32 = arith.constant 0 : i32
    %c0_i32_0 = arith.constant 0 : i32
    return %arg0, %c0_i32 : i32, i32
  }
}

</mosaic_0001>

<bundles_post_ra>
// kernel: tpu_custom_call.1
= control target key start
LH: loop header
LB: loop body
LE: loop exit
PB: predicated region body
PF: predicated region fallthrough
CT: control target
= control target key end

     0   :  { %9 = vsyncpa [#allocation3], 0  ;;  %s904_s0 = inlined_call_operand.hbm [shape: f32[64,128], index: 0, kind: input, shape index: {}]   ;;  %s905_s1 = inlined_call_operand.hbm [shape: f32[128,512], index: 1, kind: input, shape index: {}]   ;;  %s906_s2 = inlined_call_operand.hbm [shape: f32[1,512], index: 2, kind: input, shape index: {}]   ;;  %s907_s3 = inlined_call_operand.hbm [shape: f32[3,128,128], index: 3, kind: input, shape index: {}]   ;;  %s908_s4 = inlined_call_operand.hbm [shape: f32[64,128], index: 4, kind: output, shape index: {}]  }
   0x1   :  { %10 = vsyncpa [#allocation6], 0 }
   0x2   :  { %11 = vsyncpa [#allocation9], 0  ;;  %s30_s17 = sshll.u32 %s905_s1, 4  ;;  %s31_s17 = int_to_ptr.hbm [resolvable:$true] %s30_s17 }
   0x3   :  { %12 = vsyncpa [#allocation4], 0  ;;  %s752_s18 = smov [#allocation5]   ;;  %s17_s22 = sshll.u32 %s904_s0, 4  ;;  %s18_s22 = int_to_ptr.hbm [resolvable:$true] %s17_s22 }
   0x4   :  { %s32_s19 = sshll.u32 %s752_s18, 4  ;;  %s753_s23 = smov 512   ;;  %s33_s19 = int_to_ptr.vmem [resolvable:$true] %s32_s19 }
   0x5   :  { %s754_s24 = smov 32   ;;  %s755_s25 = smov [#allocation2]  }
   0x6   :  { %38 = dma.hbm_to_vmem [thread:$0]  %s31_s17, 8192, %s33_s19, [#allocation6], %s753_s23, %s753_s23, %s754_s24  }
   0x7   :  { %s19_s26 = sshll.u32 %s755_s25, 4  ;;  %s756_s27 = smov 128   ;;  %s20_s26 = int_to_ptr.vmem [resolvable:$true] %s19_s26 }
   0x8   :  { %s757_s28 = smov 8   ;;  %s44_s30 = sshll.u32 %s906_s2, 4  ;;  %s45_s30 = int_to_ptr.hbm [resolvable:$true] %s44_s30 }
   0x9   :  { %25 = dma.hbm_to_vmem [thread:$0]  %s18_s22, 1024, %s20_s26, [#allocation3], %s756_s27, %s756_s27, %s757_s28  }
   0xa   :  { %s758_s5 = smov [#allocation7]   ;;  %s54_s8 = sshll.u32 %s907_s3, 4  ;;  %s55_s8 = int_to_ptr.hbm [resolvable:$true] %s54_s8 }
   0xb   :  { %s46_s0 = sshll.u32 %s758_s5, 4  ;;  %s759_s9 = smov [#allocation8]   ;;  %s47_s0 = int_to_ptr.vmem [resolvable:$true] %s46_s0 }
   0xc   :  { %49 = dma.hbm_to_vmem [thread:$0]  %s45_s30, 64, %s47_s0, [#allocation6]  }
   0xd   :  { %s56_s10 = sshll.u32 %s759_s9, 4  ;;  %s57_s10 = int_to_ptr.vmem [resolvable:$true] %s56_s10 }
   0xe   :  { %62 = dma.hbm_to_vmem [thread:$0]  %s55_s8, 6144, %s57_s10, [#allocation9], %s756_s27, %s756_s27, %s757_s28  }
   0xf   :  { %744 = dma.done.wait [#allocation3], 1024  }
  0x10   :  { %745 = vsyncadd [#allocation3], 4294966272 }
  0x11   :  { %746 = dma.done.wait [#allocation6], 8256  }
  0x12   :  { %747 = vsyncadd [#allocation6], 4294959040 }
  0x13   :  { %748 = dma.done.wait [#allocation9], 6144  }
  0x14   :  { %749 = vsyncadd [#allocation9], 4294961152  ;;  %v147_v0 = vld [vmem:[#allocation5 + $0x1e0] sm:$0xff]  ;;  %v148_v14 = vld [vmem:[#allocation5 + $0x1e8] sm:$0xff]  ;;  %s760_s2 = smov [#allocation10]   ;;  %s552_s13 = sshll.u32 %s908_s4, 4  ;;  %s553_s13 = int_to_ptr.hbm [resolvable:$true] %s552_s13 }
  0x15   :  { %v143_v1 = vld [vmem:[#allocation5 + $0x1c0] sm:$0xff]  ;;  %161 = vmatpush.msra.mxu0 %v147_v0  ;;  %567 = vmatpush.msra.mxu3 %v147_v0  ;;  %v144_v16 = vld [vmem:[#allocation5 + $0x1c8] sm:$0xff]  ;;  %v339_v23 = vld [vmem:[#allocation8 + $0x70] sm:$0xff]  ;;  %s550_s3 = sshll.u32 %s760_s2, 4  ;;  %s551_s3 = int_to_ptr.vmem [resolvable:$true] %s550_s3 }
  0x16   :  { %v139_v2 = vld [vmem:[#allocation5 + $0x1a0] sm:$0xff]  ;;  %202 = vmatpush.msra.mxu1 %v148_v14  ;;  %v140_v17 = vld [vmem:[#allocation5 + $0x1a8] sm:$0xff]  ;;  %v335_v33 = vld [vmem:[#allocation8 + $0x50] sm:$0xff] }
  0x17   :  { %162 = vmatpush.msra.mxu0 %v143_v1  ;;  %568 = vmatpush.msra.mxu3 %v143_v1  ;;  %v135_v3 = vld [vmem:[#allocation5 + $0x180] sm:$0xff]  ;;  %v136_v22 = vld [vmem:[#allocation5 + $0x188] sm:$0xff]  ;;  %v816_v39 = vld [vmem:[#allocation2 + $0x10] sm:$0xff] }
  0x18   :  { %v131_v4 = vld [vmem:[#allocation5 + $0x160] sm:$0xff]  ;;  %203 = vmatpush.msra.mxu1 %v144_v16  ;;  %v132_v24 = vld [vmem:[#allocation5 + $0x168] sm:$0xff]  ;;  %v818_v40 = vld [vmem:[#allocation2 + $0x30] sm:$0xff] }
  0x19   :  { %163 = vmatpush.msra.mxu0 %v139_v2  ;;  %569 = vmatpush.msra.mxu3 %v139_v2  ;;  %v127_v5 = vld [vmem:[#allocation5 + $0x140] sm:$0xff]  ;;  %v338_v25 = vld [vmem:[#allocation8 + $0x68] sm:$0xff]  ;;  %v331_v43 = vld [vmem:[#allocation8 + $0x30] sm:$0xff] }
  0x1a   :  { %v123_v6 = vld [vmem:[#allocation5 + $0x120] sm:$0xff]  ;;  %204 = vmatpush.msra.mxu1 %v140_v17  ;;  %v128_v26 = vld [vmem:[#allocation5 + $0x148] sm:$0xff]  ;;  %v822_v49 = vld [vmem:[#allocation2 + $0x18] sm:$0xff] }
  0x1b   :  { %164 = vmatpush.msra.mxu0 %v135_v3  ;;  %570 = vmatpush.msra.mxu3 %v135_v3  ;;  %v119_v7 = vld [vmem:[#allocation5 + $0x100] sm:$0xff]  ;;  %v124_v28 = vld [vmem:[#allocation5 + $0x128] sm:$0xff]  ;;  %v824_v50 = vld [vmem:[#allocation2 + $0x38] sm:$0xff] }
  0x1c   :  { %v115_v8 = vld [vmem:[#allocation5 + $0xe0] sm:$0xff]  ;;  %205 = vmatpush.msra.mxu1 %v136_v22  ;;  %v810_v29 = vld [vmem:[#allocation2 + $0x8] sm:$0xff]  ;;  %v327_v52 = vld [vmem:[#allocation8 + $0x10] sm:$0xff] }
  0x1d   :  { %165 = vmatpush.msra.mxu0 %v131_v4  ;;  %571 = vmatpush.msra.mxu3 %v131_v4  ;;  %v111_v9 = vld [vmem:[#allocation5 + $0xc0] sm:$0xff]  ;;  %v812_v30 = vld [vmem:[#allocation2 + $0x28] sm:$0xff]  ;;  %v413_v4 = vld [vmem:[#allocation8 + $0xf0] sm:$0xff] }
  0x1e   :  { %v107_v10 = vld [vmem:[#allocation5 + $0xa0] sm:$0xff]  ;;  %206 = vmatpush.msra.mxu1 %v132_v24  ;;  %v120_v32 = vld [vmem:[#allocation5 + $0x108] sm:$0xff]  ;;  %v133_v14 = vld [vmem:[#allocation5 + $0x170] sm:$0xff] }
  0x1f   :  { %166 = vmatpush.msra.mxu0 %v127_v5  ;;  %572 = vmatpush.msra.mxu3 %v127_v5  ;;  %v103_v11 = vld [vmem:[#allocation5 + $0x80] sm:$0xff]  ;;  %v116_v34 = vld [vmem:[#allocation5 + $0xe8] sm:$0xff]  ;;  %v149_v5 = vld [vmem:[#allocation5 + $0x1f0] sm:$0xff] }
  0x20   :  { %v99_v12 = vld [vmem:[#allocation5 + $0x60] sm:$0xff]  ;;  %207 = vmatpush.msra.mxu1 %v128_v26  ;;  %v334_v35 = vld [vmem:[#allocation8 + $0x48] sm:$0xff]  ;;  %243 = vmatpush.msra.mxu2 %v149_v5 }
  0x21   :  { %167 = vmatpush.msra.mxu0 %v123_v6  ;;  %573 = vmatpush.msra.mxu3 %v123_v6  ;;  %v95_v13 = vld [vmem:[#allocation5 + $0x40] sm:$0xff]  ;;  %v112_v36 = vld [vmem:[#allocation5 + $0xc8] sm:$0xff]  ;;  %v145_v6 = vld [vmem:[#allocation5 + $0x1d0] sm:$0xff] }
  0x22   :  { %v91_v15 = vld [vmem:[#allocation5 + $0x20] sm:$0xff]  ;;  %208 = vmatpush.msra.mxu1 %v124_v28  ;;  %v108_v38 = vld [vmem:[#allocation5 + $0xa8] sm:$0xff]  ;;  %244 = vmatpush.msra.mxu2 %v145_v6  ;;  %v129_v16 = vld [vmem:[#allocation5 + $0x150] sm:$0xff] }
  0x23   :  { %168 = vmatpush.msra.mxu0 %v119_v7  ;;  %574 = vmatpush.msra.mxu3 %v119_v7  ;;  %v87_v18 = vld [vmem:[#allocation5] sm:$0xff]  ;;  %v104_v42 = vld [vmem:[#allocation5 + $0x88] sm:$0xff]  ;;  %v117_v26 = vld [vmem:[#allocation5 + $0xf0] sm:$0xff] }
  0x24   :  { %v804_v19 = vld [vmem:[#allocation2] sm:$0xff]  ;;  %209 = vmatpush.msra.mxu1 %v120_v32  ;;  %v100_v44 = vld [vmem:[#allocation5 + $0x68] sm:$0xff]  ;;  %v113_v28 = vld [vmem:[#allocation5 + $0xd0] sm:$0xff] }
  0x25   :  { %169 = vmatpush.msra.mxu0 %v115_v8  ;;  %575 = vmatpush.msra.mxu3 %v115_v8  ;;  %v806_v20 = vld [vmem:[#allocation2 + $0x20] sm:$0xff]  ;;  %v330_v45 = vld [vmem:[#allocation8 + $0x28] sm:$0xff] }
  0x26   :  { %v340_v21 = vld [vmem:[#allocation8 + $0x78] sm:$0xff]  ;;  %v337_v27 = vld [vmem:[#allocation8 + $0x60] sm:$0xff]  ;;  %210 = vmatpush.msra.mxu1 %v116_v34  ;;  %v326_v53 = vld [vmem:[#allocation8 + $0x8] sm:$0xff] }
  0x27   :  { %170 = vmatpush.msra.mxu0 %v111_v9  ;;  %576 = vmatpush.msra.mxu3 %v111_v9  ;;  %v336_v31 = vld [vmem:[#allocation8 + $0x58] sm:$0xff]  ;;  %v333_v37 = vld [vmem:[#allocation8 + $0x40] sm:$0xff]  ;;  %v412_v7 = vld [vmem:[#allocation8 + $0xe8] sm:$0xff] }
  0x28   :  { %211 = vmatpush.msra.mxu1 %v112_v36  ;;  %v332_v41 = vld [vmem:[#allocation8 + $0x38] sm:$0xff]  ;;  %v96_v46 = vld [vmem:[#allocation5 + $0x48] sm:$0xff]  ;;  %v141_v8 = vld [vmem:[#allocation5 + $0x1b0] sm:$0xff] }
  0x29   :  { %171 = vmatpush.msra.mxu0 %v107_v10  ;;  %577 = vmatpush.msra.mxu3 %v107_v10  ;;  %v329_v47 = vld [vmem:[#allocation8 + $0x20] sm:$0xff]  ;;  %v328_v51 = vld [vmem:[#allocation8 + $0x18] sm:$0xff]  ;;  %v408_v17 = vld [vmem:[#allocation8 + $0xc8] sm:$0xff] }
  0x2a   :  { %212 = vmatpush.msra.mxu1 %v108_v38  ;;  %v92_v48 = vld [vmem:[#allocation5 + $0x28] sm:$0xff]  ;;  %v832_v56 = vld [vmem:[#allocation7] sm:$0xf]  ;;  %245 = vmatpush.msra.mxu2 %v141_v8  ;;  %v109_v32 = vld [vmem:[#allocation5 + $0xb0] sm:$0xff] }
  0x2b   :  { %172 = vmatpush.msra.mxu0 %v103_v11  ;;  %578 = vmatpush.msra.mxu3 %v103_v11  ;;  %v88_v54 = vld [vmem:[#allocation5 + $0x8] sm:$0xff]  ;;  %v835_v57 = vperm.slane %v832_v56, 0  ;;  %v414_v3 = vld [vmem:[#allocation8 + $0xf8] sm:$0xff]  ;;  %v101_v36 = vld [vmem:[#allocation5 + $0x70] sm:$0xff] }
  0x2c   :  { %213 = vmatpush.msra.mxu1 %v104_v42  ;;  %v325_v55 = vld [vmem:[#allocation8] sm:$0xff]  ;;  %v406_v24 = vld [vmem:[#allocation8 + $0xb8] sm:$0xff]  ;;  %v97_v38 = vld [vmem:[#allocation5 + $0x50] sm:$0xff] }
  0x2d   :  { %173 = vmatpush.msra.mxu0 %v99_v12  ;;  %579 = vmatpush.msra.mxu3 %v99_v12  ;;  %v411_v10 = vld [vmem:[#allocation8 + $0xe0] sm:$0xff]  ;;  %v137_v12 = vld [vmem:[#allocation5 + $0x190] sm:$0xff] }
  0x2e   :  { %214 = vmatpush.msra.mxu1 %v100_v44  ;;  %246 = vmatpush.msra.mxu2 %v137_v12  ;;  %v407_v22 = vld [vmem:[#allocation8 + $0xc0] sm:$0xff]  ;;  %v402_v44 = vld [vmem:[#allocation8 + $0x98] sm:$0xff] }
  0x2f   :  { %174 = vmatpush.msra.mxu0 %v95_v13  ;;  %580 = vmatpush.msra.mxu3 %v95_v13  ;;  %v410_v13 = vld [vmem:[#allocation8 + $0xd8] sm:$0xff]  ;;  %v403_v34 = vld [vmem:[#allocation8 + $0xa0] sm:$0xff] }
  0x30   :  { %215 = vmatpush.msra.mxu1 %v96_v46  ;;  %247 = vmatpush.msra.mxu2 %v133_v14  ;;  %v400_v46 = vld [vmem:[#allocation8 + $0x88] sm:$0xff]  ;;  %v146_v12 = vld [vmem:[#allocation5 + $0x1d8] sm:$0xff] }
  0x31   :  { %175 = vmatpush.msra.mxu0 %v91_v15  ;;  %581 = vmatpush.msra.mxu3 %v91_v15  ;;  %v409_v15 = vld [vmem:[#allocation8 + $0xd0] sm:$0xff] }
  0x32   :  { %216 = vmatpush.msra.mxu1 %v92_v48  ;;  %248 = vmatpush.msra.mxu2 %v129_v16  ;;  %v868_v14 = vld [vmem:[#allocation8 + $0x170] sm:$0xff]  ;;  %v870_v16 = vld [vmem:[#allocation8 + $0x168] sm:$0xff] }
  0x33   :  { %176 = vmatpush.msra.mxu0 %v87_v18  ;;  %582 = vmatpush.msra.mxu3 %v87_v18  ;;  %v125_v18 = vld [vmem:[#allocation5 + $0x130] sm:$0xff] }
  0x34   :  { %177 = vmatmul.f32.vlgmr.msra.gmra.mxu0 %v804_v19  ;;  %189 = vmatmul.f32.vlgmr.msra.gmra.mxu3 %v806_v20 }
  0x35   :  { %341 = vmatpush.msrb.mxu0 %v340_v21  ;;  %217 = vmatpush.msra.mxu1 %v88_v54 }
  0x36   :  { %218 = vmatmul.f32.vlgmr.msra.gmra.mxu1 %v804_v19  ;;  %249 = vmatpush.msra.mxu2 %v125_v18 }
  0x37   :  { %342 = vmatpush.msrb.mxu0 %v339_v23  ;;  %583 = vmatpush.msrb.mxu1 %v414_v3  ;;  %v121_v23 = vld [vmem:[#allocation5 + $0x110] sm:$0xff] }
  0x38   :  { %250 = vmatpush.msra.mxu2 %v121_v23 }
  0x39   :  { %343 = vmatpush.msrb.mxu0 %v338_v25  ;;  %584 = vmatpush.msrb.mxu1 %v413_v4 }
  0x3a   :  { %251 = vmatpush.msra.mxu2 %v117_v26 }
  0x3b   :  { %344 = vmatpush.msrb.mxu0 %v337_v27  ;;  %585 = vmatpush.msrb.mxu1 %v412_v7  ;;  %v405_v27 = vld [vmem:[#allocation8 + $0xb0] sm:$0xff] }
  0x3c   :  { %180 = vmatmul.f32.gmra.mxu0 %v810_v29  ;;  %192 = vmatmul.f32.gmra.mxu3 %v812_v30 }
  0x3d   :  { %345 = vmatpush.msrb.mxu0 %v336_v31  ;;  %586 = vmatpush.msrb.mxu1 %v411_v10  ;;  %v404_v31 = vld [vmem:[#allocation8 + $0xa8] sm:$0xff] }
  0x3e   :  { %221 = vmatmul.f32.gmra.mxu1 %v810_v29  ;;  %252 = vmatpush.msra.mxu2 %v113_v28  ;;  %v483_v28 = vld [vmem:[#allocation8 + $0x150] sm:$0xff] }
  0x3f   :  { %346 = vmatpush.msrb.mxu0 %v335_v33  ;;  %587 = vmatpush.msrb.mxu1 %v410_v13 }
  0x40   :  { %253 = vmatpush.msra.mxu2 %v109_v32  ;;  %v482_v32 = vld [vmem:[#allocation8 + $0x148] sm:$0xff] }
  0x41   :  { %347 = vmatpush.msrb.mxu0 %v334_v35  ;;  %588 = vmatpush.msrb.mxu1 %v409_v15  ;;  %v105_v35 = vld [vmem:[#allocation5 + $0x90] sm:$0xff] }
  0x42   :  { %254 = vmatpush.msra.mxu2 %v105_v35 }
  0x43   :  { %348 = vmatpush.msrb.mxu0 %v333_v37  ;;  %589 = vmatpush.msrb.mxu1 %v408_v17 }
  0x44   :  { %183 = vmatmul.f32.gmra.mxu0 %v816_v39  ;;  %195 = vmatmul.f32.gmra.mxu3 %v818_v40 }
  0x45   :  { %349 = vmatpush.msrb.mxu0 %v332_v41  ;;  %590 = vmatpush.msrb.mxu1 %v407_v22  ;;  %v93_v41 = vld [vmem:[#allocation5 + $0x30] sm:$0xff] }
  0x46   :  { %224 = vmatmul.f32.gmra.mxu1 %v816_v39  ;;  %255 = vmatpush.msra.mxu2 %v101_v36  ;;  %v122_v36 = vld [vmem:[#allocation5 + $0x118] sm:$0xff] }
  0x47   :  { %350 = vmatpush.msrb.mxu0 %v331_v43  ;;  %591 = vmatpush.msrb.mxu1 %v406_v24  ;;  %v89_v43 = vld [vmem:[#allocation5 + $0x10] sm:$0xff] }
  0x48   :  { %256 = vmatpush.msra.mxu2 %v97_v38 }
  0x49   :  { %351 = vmatpush.msrb.mxu0 %v330_v45  ;;  %592 = vmatpush.msrb.mxu1 %v405_v27  ;;  %v401_v45 = vld [vmem:[#allocation8 + $0x90] sm:$0xff] }
  0x4a   :  { %257 = vmatpush.msra.mxu2 %v93_v41  ;;  %v118_v41 = vld [vmem:[#allocation5 + $0xf8] sm:$0xff] }
  0x4b   :  { %352 = vmatpush.msrb.mxu0 %v329_v47  ;;  %593 = vmatpush.msrb.mxu1 %v404_v31  ;;  %v399_v47 = vld [vmem:[#allocation8 + $0x80] sm:$0xff] }
  0x4c   :  { %186 = vmatmul.f32.gmra.mxu0 %v822_v49  ;;  %198 = vmatmul.f32.gmra.mxu3 %v824_v50 }
  0x4d   :  { %353 = vmatpush.msrb.mxu0 %v328_v51  ;;  %594 = vmatpush.msrb.mxu1 %v403_v34 }
  0x4e   :  { %227 = vmatmul.f32.gmra.mxu1 %v822_v49  ;;  %258 = vmatpush.msra.mxu2 %v89_v43 }
  0x4f   :  { %354 = vmatpush.msrb.mxu0 %v327_v52  ;;  %259 = vmatmul.f32.vlgmr.msra.gmra.mxu2 %v804_v19  ;;  %v858_v52 = vperm.slane %v832_v56, 1 }
  0x50   :  { %595 = vmatpush.msrb.mxu1 %v402_v44 }
  0x51   :  { %355 = vmatpush.msrb.mxu0 %v326_v53 }
  0x52   :  { %596 = vmatpush.msrb.mxu1 %v401_v45 }
  0x53   :  { %356 = vmatpush.msrb.mxu0 %v325_v55 }
  0x54   :  { %597 = vmatpush.msrb.mxu1 %v400_v46 }
  0x55   :  { %415 = vmatpush.msra.mxu0 %v414_v3 }
  0x56   :  { %230 = vmatmul.f32.gmra.mxu1 %v806_v20 }
  0x57   :  { %416 = vmatpush.msra.mxu0 %v413_v4  ;;  %262 = vmatmul.f32.gmra.mxu2 %v810_v29 }
  0x58   :  { %598 = vmatpush.msrb.mxu1 %v399_v47 }
  0x59   :  { %417 = vmatpush.msra.mxu0 %v412_v7 }
  0x5b   :  { %418 = vmatpush.msra.mxu0 %v411_v10  ;;  %v150_v10 = vld [vmem:[#allocation5 + $0x1f8] sm:$0xff] }
  0x5c   :  { %284 = vmatpush.msrb.mxu3 %v150_v10 }
  0x5d   :  { %419 = vmatpush.msra.mxu0 %v410_v13 }
  0x5e   :  { %233 = vmatmul.f32.gmra.mxu1 %v812_v30  ;;  %285 = vmatpush.msrb.mxu3 %v146_v12 }
  0x5f   :  { %420 = vmatpush.msra.mxu0 %v409_v15  ;;  %265 = vmatmul.f32.gmra.mxu2 %v816_v39  ;;  %v142_v15 = vld [vmem:[#allocation5 + $0x1b8] sm:$0xff] }
  0x60   :  { %286 = vmatpush.msrb.mxu3 %v142_v15 }
  0x61   :  { %421 = vmatpush.msra.mxu0 %v408_v17 }
  0x63   :  { %422 = vmatpush.msra.mxu0 %v407_v22  ;;  %v873_v22 = vld [vmem:[#allocation8 + $0x160] sm:$0xff] }
  0x65   :  { %423 = vmatpush.msra.mxu0 %v406_v24  ;;  %v134_v24 = vld [vmem:[#allocation5 + $0x178] sm:$0xff] }
  0x66   :  { %236 = vmatmul.f32.gmra.mxu1 %v818_v40 }
  0x67   :  { %424 = vmatpush.msra.mxu0 %v405_v27  ;;  %268 = vmatmul.f32.gmra.mxu2 %v822_v49  ;;  %v130_v27 = vld [vmem:[#allocation5 + $0x158] sm:$0xff] }
  0x69   :  { %425 = vmatpush.msra.mxu0 %v404_v31  ;;  %v126_v31 = vld [vmem:[#allocation5 + $0x138] sm:$0xff] }
  0x6b   :  { %426 = vmatpush.msra.mxu0 %v403_v34 }
  0x6d   :  { %427 = vmatpush.msra.mxu0 %v402_v44  ;;  %v114_v44 = vld [vmem:[#allocation5 + $0xd8] sm:$0xff] }
  0x6e   :  { %239 = vmatmul.f32.gmra.mxu1 %v824_v50 }
  0x6f   :  { %271 = vmatmul.f32.gmra.mxu2 %v806_v20  ;;  %428 = vmatpush.msra.mxu0 %v401_v45  ;;  %v479_v45 = vld [vmem:[#allocation8 + $0x130] sm:$0xff] }
  0x71   :  { %429 = vmatpush.msra.mxu0 %v400_v46  ;;  %v110_v46 = vld [vmem:[#allocation5 + $0xb8] sm:$0xff] }
  0x73   :  { %430 = vmatpush.msra.mxu0 %v399_v47  ;;  %v478_v47 = vld [vmem:[#allocation8 + $0x128] sm:$0xff] }
  0x77   :  { %274 = vmatmul.f32.gmra.mxu2 %v812_v30 }
  0x7f   :  { %277 = vmatmul.f32.gmra.mxu2 %v818_v40 }
  0x87   :  { %280 = vmatmul.f32.gmra.mxu2 %v824_v50 }
  0xb1   :  { %v178_v58 = vpop.f32.mrf.mxu0 }
  0xb2   :  { %v179_v59 = vadd.f32 %v178_v58, %v835_v57 }
  0xb3   :  { %v219_v48 = vpop.f32.mrf.mxu1 }
  0xb4   :  { %357 = vmatmul.f32.vlgmr.msrb.gmra.mxu0 %v179_v59  ;;  %v220_v53 = vadd.f32 %v219_v48, %v858_v52 }
  0xb7   :  { %v190_v0 = vpop.f32.mrf.mxu3 }
  0xb8   :  { %v191_v9 = vadd.f32 %v190_v0, %v835_v57 }
  0xb9   :  { %v181_v60 = vpop.f32.mrf.mxu0 }
  0xba   :  { %v182_v61 = vadd.f32 %v181_v60, %v835_v57 }
  0xbb   :  { %v222_v51 = vpop.f32.mrf.mxu1 }
  0xbc   :  { %360 = vmatmul.f32.gmra.mxu0 %v182_v61  ;;  %v223_v59 = vadd.f32 %v222_v51, %v858_v52 }
  0xbf   :  { %v193_v11 = vpop.f32.mrf.mxu3 }
  0xc0   :  { %v194_v21 = vadd.f32 %v193_v11, %v835_v57  ;;  %v865_v11 = vld [vmem:[#allocation8 + $0x178] sm:$0xff] }
  0xc1   :  { %v184_v62 = vpop.f32.mrf.mxu0  ;;  %489 = vmatpush.msrb.mxu2 %v865_v11 }
  0xc2   :  { %v185_v63 = vadd.f32 %v184_v62, %v835_v57 }
  0xc3   :  { %v225_v55 = vpop.f32.mrf.mxu1  ;;  %490 = vmatpush.msrb.mxu2 %v868_v14 }
  0xc4   :  { %363 = vmatmul.f32.gmra.mxu0 %v185_v63  ;;  %v226_v0 = vadd.f32 %v225_v55, %v858_v52 }
  0xc5   :  { %491 = vmatpush.msrb.mxu2 %v870_v16 }
  0xc7   :  { %v196_v25 = vpop.f32.mrf.mxu3  ;;  %492 = vmatpush.msrb.mxu2 %v873_v22 }
  0xc8   :  { %v197_v33 = vadd.f32 %v196_v25, %v835_v57  ;;  %v876_v25 = vld [vmem:[#allocation8 + $0x158] sm:$0xff] }
  0xc9   :  { %v187_v1 = vpop.f32.mrf.mxu0  ;;  %493 = vmatpush.msrb.mxu2 %v876_v25 }
  0xca   :  { %v188_v2 = vadd.f32 %v187_v1, %v835_v57 }
  0xcb   :  { %v228_v62 = vpop.f32.mrf.mxu1  ;;  %494 = vmatpush.msrb.mxu2 %v483_v28 }
  0xcc   :  { %366 = vmatmul.f32.gmra.mxu0 %v188_v2  ;;  %v229_v5 = vadd.f32 %v228_v62, %v858_v52  ;;  %v94_v62 = vld [vmem:[#allocation5 + $0x38] sm:$0xff] }
  0xcd   :  { %495 = vmatpush.msrb.mxu2 %v482_v32 }
  0xcf   :  { %v199_v37 = vpop.f32.mrf.mxu3 }
  0xd0   :  { %v200_v42 = vadd.f32 %v199_v37, %v835_v57  ;;  %v481_v37 = vld [vmem:[#allocation8 + $0x140] sm:$0xff] }
  0xd1   :  { %496 = vmatpush.msrb.mxu2 %v481_v37 }
  0xd3   :  { %v231_v4 = vpop.f32.mrf.mxu1 }
  0xd4   :  { %369 = vmatmul.f32.gmra.mxu0 %v191_v9  ;;  %v232_v9 = vadd.f32 %v231_v4, %v858_v52 }
  0xdb   :  { %v234_v13 = vpop.f32.mrf.mxu1 }
  0xdc   :  { %372 = vmatmul.f32.gmra.mxu0 %v194_v21  ;;  %v138_v21 = vld [vmem:[#allocation5 + $0x198] sm:$0xff]  ;;  %v235_v26 = vadd.f32 %v234_v13, %v858_v52 }
  0xdd   :  { %287 = vmatpush.msrb.mxu3 %v138_v21 }
  0xdf   :  { %288 = vmatpush.msrb.mxu3 %v134_v24 }
  0xe1   :  { %289 = vmatpush.msrb.mxu3 %v130_v27 }
  0xe3   :  { %v237_v34 = vpop.f32.mrf.mxu1  ;;  %290 = vmatpush.msrb.mxu3 %v126_v31 }
  0xe4   :  { %375 = vmatmul.f32.gmra.mxu0 %v197_v33  ;;  %v238_v43 = vadd.f32 %v237_v34, %v858_v52 }
  0xe5   :  { %291 = vmatpush.msrb.mxu3 %v122_v36 }
  0xe7   :  { %292 = vmatpush.msrb.mxu3 %v118_v41 }
  0xe9   :  { %293 = vmatpush.msrb.mxu3 %v114_v44 }
  0xeb   :  { %v240_v55 = vpop.f32.mrf.mxu1  ;;  %294 = vmatpush.msrb.mxu3 %v110_v46 }
  0xec   :  { %378 = vmatmul.f32.gmra.mxu0 %v200_v42  ;;  %v480_v42 = vld [vmem:[#allocation8 + $0x138] sm:$0xff] }
  0xed   :  { %497 = vmatpush.msrb.mxu2 %v480_v42 }
  0xef   :  { %498 = vmatpush.msrb.mxu2 %v479_v45 }
  0xf1   :  { %499 = vmatpush.msrb.mxu2 %v478_v47 }
 0x131   :  { %v358_v54 = vpop.f32.mrf.mxu0 }
 0x132   :  { %v382_v57 = vadd.f32 %v358_v54, %v220_v53  ;;  %v106_v53 = vld [vmem:[#allocation5 + $0x98] sm:$0xff]  ;;  %v477_v54 = vld [vmem:[#allocation8 + $0x120] sm:$0xff] }
 0x133   :  { %295 = vmatpush.msrb.mxu3 %v106_v53  ;;  %500 = vmatpush.msrb.mxu2 %v477_v54 }
 0x134   :  { %v390_v58 = vmax.f32 %v382_v57, 0.0 }
 0x136   :  { %431 = vmatmul.f32.vlgmr.msra.gmra.mxu0 %v390_v58  ;;  %v102_v58 = vld [vmem:[#allocation5 + $0x78] sm:$0xff] }
 0x137   :  { %296 = vmatpush.msrb.mxu3 %v102_v58 }
 0x139   :  { %v361_v60 = vpop.f32.mrf.mxu0 }
 0x13a   :  { %v383_v61 = vadd.f32 %v361_v60, %v223_v59  ;;  %v476_v59 = vld [vmem:[#allocation8 + $0x118] sm:$0xff]  ;;  %v241_v60 = vadd.f32 %v240_v55, %v858_v52  ;;  %v473_v52 = vld [vmem:[#allocation8 + $0x100] sm:$0xff] }
 0x13b   :  { %501 = vmatpush.msrb.mxu2 %v476_v59 }
 0x13c   :  { %v391_v63 = vmax.f32 %v383_v61, 0.0  ;;  %v98_v61 = vld [vmem:[#allocation5 + $0x58] sm:$0xff] }
 0x13d   :  { %297 = vmatpush.msrb.mxu3 %v98_v61 }
 0x13e   :  { %434 = vmatmul.f32.gmra.mxu0 %v391_v63 }
 0x13f   :  { %298 = vmatpush.msrb.mxu3 %v94_v62 }
 0x141   :  { %v364_v1 = vpop.f32.mrf.mxu0 }
 0x142   :  { %v384_v2 = vadd.f32 %v364_v1, %v226_v0  ;;  %v90_v1 = vld [vmem:[#allocation5 + $0x18] sm:$0xff] }
 0x143   :  { %299 = vmatpush.msrb.mxu3 %v90_v1 }
 0x144   :  { %v392_v3 = vmax.f32 %v384_v2, 0.0  ;;  %300 = vmatmul.f32.vlgmr.msrb.gmra.mxu3 %v804_v19  ;;  %v475_v19 = vld [vmem:[#allocation8 + $0x110] sm:$0xff] }
 0x145   :  { %599 = vmatpush.msra.mxu3 %v865_v11  ;;  %502 = vmatpush.msrb.mxu2 %v475_v19 }
 0x146   :  { %437 = vmatmul.f32.vlgmr.msrb.gmra.mxu1 %v392_v3  ;;  %v155_v3 = vperm.slane %v832_v56, 2 }
 0x147   :  { %600 = vmatpush.msra.mxu3 %v868_v14 }
 0x149   :  { %v367_v6 = vpop.f32.mrf.mxu0  ;;  %601 = vmatpush.msra.mxu3 %v870_v16 }
 0x14a   :  { %v385_v7 = vadd.f32 %v367_v6, %v229_v5 }
 0x14b   :  { %602 = vmatpush.msra.mxu3 %v873_v22 }
 0x14c   :  { %v393_v8 = vmax.f32 %v385_v7, 0.0  ;;  %303 = vmatmul.f32.gmra.mxu3 %v810_v29  ;;  %v474_v29 = vld [vmem:[#allocation8 + $0x108] sm:$0xff] }
 0x14d   :  { %603 = vmatpush.msra.mxu3 %v876_v25  ;;  %503 = vmatpush.msrb.mxu2 %v474_v29 }
 0x14e   :  { %440 = vmatmul.f32.gmra.mxu1 %v393_v8 }
 0x14f   :  { %604 = vmatpush.msra.mxu3 %v483_v28  ;;  %504 = vmatpush.msrb.mxu2 %v473_v52 }
 0x151   :  { %v370_v17 = vpop.f32.mrf.mxu0  ;;  %605 = vmatpush.msra.mxu3 %v482_v32 }
 0x152   :  { %v386_v18 = vadd.f32 %v370_v17, %v232_v9 }
 0x153   :  { %606 = vmatpush.msra.mxu3 %v481_v37 }
 0x154   :  { %v394_v23 = vmax.f32 %v386_v18, 0.0  ;;  %306 = vmatmul.f32.gmra.mxu3 %v816_v39  ;;  %v260_v39 = vpop.f32.mrf.mxu2 }
 0x155   :  { %607 = vmatpush.msra.mxu3 %v480_v42 }
 0x156   :  { %443 = vmatmul.f32.gmra.mxu1 %v394_v23 }
 0x157   :  { %608 = vmatpush.msra.mxu3 %v479_v45 }
 0x159   :  { %v373_v33 = vpop.f32.mrf.mxu0  ;;  %609 = vmatpush.msra.mxu3 %v478_v47  ;;  %v156_v47 = vperm.slane %v832_v56, 3 }
 0x15a   :  { %v387_v35 = vadd.f32 %v373_v33, %v235_v26 }
 0x15b   :  { %610 = vmatpush.msra.mxu3 %v477_v54 }
 0x15c   :  { %v395_v38 = vmax.f32 %v387_v35, 0.0  ;;  %309 = vmatmul.f32.gmra.mxu3 %v822_v49  ;;  %v263_v49 = vpop.f32.mrf.mxu2 }
 0x15d   :  { %611 = vmatpush.msra.mxu3 %v476_v59  ;;  %v264_v8 = vadd.f32 %v263_v49, %v155_v3 }
 0x15e   :  { %446 = vmatmul.f32.gmra.mxu1 %v395_v38 }
 0x15f   :  { %612 = vmatpush.msra.mxu3 %v475_v19 }
 0x161   :  { %v376_v48 = vpop.f32.mrf.mxu0  ;;  %613 = vmatpush.msra.mxu3 %v474_v29 }
 0x162   :  { %v388_v51 = vadd.f32 %v376_v48, %v238_v43 }
 0x163   :  { %614 = vmatpush.msra.mxu3 %v473_v52 }
 0x164   :  { %v396_v57 = vmax.f32 %v388_v51, 0.0  ;;  %312 = vmatmul.f32.gmra.mxu3 %v806_v20  ;;  %v261_v20 = vadd.f32 %v260_v39, %v155_v3  ;;  %v266_v5 = vpop.f32.mrf.mxu2 }
 0x165   :  { %v267_v12 = vadd.f32 %v266_v5, %v155_v3 }
 0x166   :  { %449 = vmatmul.f32.gmra.mxu1 %v396_v57 }
 0x169   :  { %v379_v63 = vpop.f32.mrf.mxu0 }
 0x16a   :  { %v389_v0 = vadd.f32 %v379_v63, %v241_v60 }
 0x16c   :  { %v397_v2 = vmax.f32 %v389_v0, 0.0  ;;  %315 = vmatmul.f32.gmra.mxu3 %v812_v30  ;;  %v269_v30 = vpop.f32.mrf.mxu2 }
 0x16d   :  { %v270_v15 = vadd.f32 %v269_v30, %v155_v3 }
 0x16e   :  { %452 = vmatmul.f32.gmra.mxu1 %v397_v2 }
 0x174   :  { %318 = vmatmul.f32.gmra.mxu3 %v818_v40 }
 0x17c   :  { %321 = vmatmul.f32.gmra.mxu3 %v824_v50  ;;  %v272_v50 = vpop.f32.mrf.mxu2 }
 0x17d   :  { %v273_v21 = vadd.f32 %v272_v50, %v155_v3 }
 0x184   :  { %v275_v22 = vpop.f32.mrf.mxu2 }
 0x185   :  { %v276_v26 = vadd.f32 %v275_v22, %v155_v3 }
 0x18c   :  { %v278_v28 = vpop.f32.mrf.mxu2 }
 0x18d   :  { %v279_v33 = vadd.f32 %v278_v28, %v155_v3 }
 0x194   :  { %v281_v36 = vpop.f32.mrf.mxu2 }
 0x195   :  { %v282_v38 = vadd.f32 %v281_v36, %v155_v3 }
 0x1b3   :  { %v432_v4 = vpop.f32.mrf.mxu0 }
 0x1b4   :  { %v456_v6 = vadd.f32 %v432_v4, %v261_v20 }
 0x1b6   :  { %v464_v7 = vmax.f32 %v456_v6, 0.0 }
 0x1b8   :  { %505 = vmatmul.f32.vlgmr.msrb.gmra.mxu2 %v464_v7 }
 0x1bb   :  { %v435_v9 = vpop.f32.mrf.mxu0 }
 0x1bc   :  { %v457_v10 = vadd.f32 %v435_v9, %v264_v8 }
 0x1be   :  { %v465_v11 = vmax.f32 %v457_v10, 0.0 }
 0x1c0   :  { %508 = vmatmul.f32.gmra.mxu2 %v465_v11 }
 0x1c3   :  { %v438_v40 = vpop.f32.mrf.mxu1 }
 0x1c4   :  { %v458_v13 = vadd.f32 %v438_v40, %v267_v12 }
 0x1c6   :  { %v466_v14 = vmax.f32 %v458_v13, 0.0 }
 0x1c7   :  { %v301_v44 = vpop.f32.mrf.mxu3 }
 0x1c8   :  { %511 = vmatmul.f32.gmra.mxu2 %v466_v14  ;;  %v302_v51 = vadd.f32 %v301_v44, %v156_v47 }
 0x1cb   :  { %v441_v16 = vpop.f32.mrf.mxu1 }
 0x1cc   :  { %v459_v17 = vadd.f32 %v441_v16, %v270_v15 }
 0x1ce   :  { %v467_v18 = vmax.f32 %v459_v17, 0.0 }
 0x1cf   :  { %v304_v45 = vpop.f32.mrf.mxu3 }
 0x1d0   :  { %514 = vmatmul.f32.gmra.mxu2 %v467_v18  ;;  %v305_v55 = vadd.f32 %v304_v45, %v156_v47 }
 0x1d3   :  { %v444_v23 = vpop.f32.mrf.mxu1 }
 0x1d4   :  { %v460_v24 = vadd.f32 %v444_v23, %v273_v21 }
 0x1d6   :  { %v468_v25 = vmax.f32 %v460_v24, 0.0 }
 0x1d7   :  { %v307_v46 = vpop.f32.mrf.mxu3 }
 0x1d8   :  { %517 = vmatmul.f32.gmra.mxu2 %v468_v25  ;;  %v308_v60 = vadd.f32 %v307_v46, %v156_v47 }
 0x1db   :  { %v447_v27 = vpop.f32.mrf.mxu1 }
 0x1dc   :  { %v461_v31 = vadd.f32 %v447_v27, %v276_v26 }
 0x1de   :  { %v469_v32 = vmax.f32 %v461_v31, 0.0 }
 0x1df   :  { %v310_v48 = vpop.f32.mrf.mxu3 }
 0x1e0   :  { %520 = vmatmul.f32.gmra.mxu2 %v469_v32  ;;  %v311_v0 = vadd.f32 %v310_v48, %v156_v47 }
 0x1e3   :  { %v450_v34 = vpop.f32.mrf.mxu1 }
 0x1e4   :  { %v462_v35 = vadd.f32 %v450_v34, %v279_v33 }
 0x1e6   :  { %v470_v37 = vmax.f32 %v462_v35, 0.0 }
 0x1e7   :  { %v313_v58 = vpop.f32.mrf.mxu3 }
 0x1e8   :  { %523 = vmatmul.f32.vlgmr.msra.gmra.mxu3 %v470_v37  ;;  %v314_v19 = vadd.f32 %v313_v58, %v156_v47 }
 0x1eb   :  { %v453_v41 = vpop.f32.mrf.mxu1 }
 0x1ec   :  { %v463_v42 = vadd.f32 %v453_v41, %v282_v38 }
 0x1ee   :  { %v471_v43 = vmax.f32 %v463_v42, 0.0 }
 0x1ef   :  { %v316_v63 = vpop.f32.mrf.mxu3 }
 0x1f0   :  { %526 = vmatmul.f32.gmra.mxu3 %v471_v43  ;;  %v317_v49 = vadd.f32 %v316_v63, %v156_v47 }
 0x1f7   :  { %v319_v56 = vpop.f32.mrf.mxu3 }
 0x1f8   :  { %v320_v4 = vadd.f32 %v319_v56, %v156_v47 }
 0x1ff   :  { %v322_v39 = vpop.f32.mrf.mxu3 }
 0x200   :  { %v323_v7 = vadd.f32 %v322_v39, %v156_v47 }
 0x23b   :  { %v506_v53 = vpop.f32.mrf.mxu2 }
 0x23c   :  { %v530_v54 = vadd.f32 %v506_v53, %v302_v51 }
 0x23e   :  { %538 = vst [vmem:[#allocation10] sm:$0xff] %v530_v54 }
 0x243   :  { %v509_v57 = vpop.f32.mrf.mxu2 }
 0x244   :  { %v531_v59 = vadd.f32 %v509_v57, %v305_v55 }
 0x246   :  { %539 = vst [vmem:[#allocation10 + $0x8] sm:$0xff] %v531_v59 }
 0x24b   :  { %v512_v61 = vpop.f32.mrf.mxu2 }
 0x24c   :  { %v532_v62 = vadd.f32 %v512_v61, %v308_v60 }
 0x24e   :  { %540 = vst [vmem:[#allocation10 + $0x10] sm:$0xff] %v532_v62 }
 0x253   :  { %v515_v1 = vpop.f32.mrf.mxu2 }
 0x254   :  { %v533_v2 = vadd.f32 %v515_v1, %v311_v0 }
 0x256   :  { %541 = vst [vmem:[#allocation10 + $0x18] sm:$0xff] %v533_v2 }
 0x25b   :  { %v518_v29 = vpop.f32.mrf.mxu2 }
 0x25c   :  { %v534_v52 = vadd.f32 %v518_v29, %v314_v19 }
 0x25e   :  { %542 = vst [vmem:[#allocation10 + $0x20] sm:$0xff] %v534_v52 }
 0x263   :  { %v521_v3 = vpop.f32.mrf.mxu2 }
 0x264   :  { %v535_v20 = vadd.f32 %v521_v3, %v317_v49 }
 0x266   :  { %543 = vst [vmem:[#allocation10 + $0x28] sm:$0xff] %v535_v20 }
 0x26b   :  { %v524_v5 = vpop.f32.mrf.mxu3 }
 0x26c   :  { %v536_v6 = vadd.f32 %v524_v5, %v320_v4 }
 0x26e   :  { %544 = vst [vmem:[#allocation10 + $0x30] sm:$0xff] %v536_v6 }
 0x273   :  { %v527_v8 = vpop.f32.mrf.mxu3 }
 0x274   :  { %v537_v9 = vadd.f32 %v527_v8, %v323_v7 }
 0x276   :  { %545 = vst [vmem:[#allocation10 + $0x38] sm:$0xff] %v537_v9 }
 0x277   :  { %558 = dma.vmem_to_hbm [thread:$0]  %s551_s3, 1024, %s553_s13, [#allocation4], %s756_s27, %s756_s27, %s757_s28  }
 0x278   :  { %750 = dma.done.wait [#allocation4], 1024  }
 0x279   :  { %751 = vsyncadd [#allocation4], 4294966272 }
 0x27a   :  { %563 = vsyncpa [#allocation3], 1 }
 0x27b   :  { %564 = vsyncpa [#allocation6], 1 }
 0x27c   :  { %565 = vsyncpa [#allocation9], 1 }
 0x27d   :  { %566 = vsyncpa [#allocation4], 1 }

</bundles_post_ra>
